<compile_context>
chip_gen: v5e
topology: v5e:2x2
jax: 0.10.0
libtpu: 0.0.40
codegen_flags: <defaults>
</compile_context>

<pallas_src>
import jax
import jax.numpy as jnp
from jax.experimental import pallas as pl
from jax.experimental.pallas import tpu as pltpu


def _attention_kernel(x_ref, h_ref,
                      wa_w_ref, wa_b_ref,
                      ua_w_ref, ua_b_ref,
                      va_w_ref, va_b_ref,
                      ctx_ref, attn_ref):
    """One grid step == one block of BB batch rows.

    x_ref:    (BB, T, D)   gru_output block
    h_ref:    (BB, 1, H)   hidden_state block
    wa_w_ref: (D, H)   wa_b_ref: (1, H)
    ua_w_ref: (H, H)   ua_b_ref: (1, H)
    va_w_ref: (1, H)   va_b_ref: (1, 1)
    ctx_ref:  (BB, 1, D)
    attn_ref: (BB, 1, T)
    """
    bb = x_ref.shape[0]

    # Hoist the (small, grid-invariant) weights out of the per-row loop.
    wa_w = wa_w_ref[...]
    ua_w = ua_w_ref[...]
    va_w = va_w_ref[...].astype(jnp.float32)                      # (1, H)
    bias = (wa_b_ref[...] + ua_b_ref[...]).astype(jnp.float32)    # (1, H)
    va_b = va_b_ref[...]                                          # (1, 1)

    def row(i, carry):
        x = x_ref[i]                                              # (T, D)
        h = h_ref[i]                                              # (1, H)

        # Wa(gru_output[i]): (T, D) @ (D, H) on the MXU, f32 accumulate.
        wa = jnp.dot(x, wa_w, preferred_element_type=jnp.float32)   # (T, H)
        # Ua(hidden[i]): tiny (1, H) @ (H, H).
        ua = jnp.dot(h, ua_w, preferred_element_type=jnp.float32)   # (1, H)

        energy = jnp.tanh(wa + ua + bias)                            # (T, H)

        # Va(energy): VPU multiply + lane reduce over H (avoids an N=1 matmul).
        scores = jnp.sum(energy * va_w, axis=-1, keepdims=True) + va_b  # (T, 1)

        # Numerically-stable softmax over T (sublane axis); exact normalization.
        m = jnp.max(scores, axis=0, keepdims=True)                   # (1, 1)
        p = jnp.exp(scores - m)                                      # (T, 1)
        w = p / jnp.sum(p, axis=0, keepdims=True)                    # (T, 1)

        # context = attn @ gru_output: broadcast multiply + sublane reduce over T.
        ctx = jnp.sum(w * x.astype(jnp.float32), axis=0, keepdims=True)  # (1, D)

        ctx_ref[i] = ctx.astype(ctx_ref.dtype)
        attn_ref[i] = jnp.transpose(w).astype(attn_ref.dtype)        # (1, T)
        return carry

    # TODO(synk): for very long T (where a (T, H) tile no longer fits comfortably
    # in VMEM/vregs), chunk the time axis with an online softmax inside this loop.
    jax.lax.fori_loop(0, bb, row, 0, unroll=bb <= 8)


def _pick_batch_block(batch, seq_len, d_in, d_hid, *, vmem_budget_bytes=12 << 20):
    """Largest divisor of `batch` that (a) keeps the double-buffered input block
    plus temporaries inside the VMEM budget (safe for v5e's 16 MiB default
    scoped VMEM, and well under v7x's 64 MiB) and (b) leaves >= ~4 grid steps so
    the BlockSpec pipeline overlaps DMA with compute and v7x's two TensorCores
    both get blocks.  Divisor choice means no batch padding / HBM pad copy."""
    if batch <= 1:
        return 1
    # Bytes that scale with BB: double-buffered (T, D) input rows plus the small
    # (1, .) hidden / ctx / attn blocks (sublane-padded to 8 rows).
    per_row = 4 * (2 * seq_len * d_in + 2 * 8 * (d_in + d_hid + seq_len))
    # Fixed bytes: weights (double-buffered) + per-row (T, H) temporaries.
    fixed = 4 * (2 * (d_in * d_hid + d_hid * d_hid + 3 * d_hid + 1)
                 + 6 * seq_len * d_hid)
    cap_vmem = max(1, (vmem_budget_bytes - fixed) // max(per_row, 1))
    cap_grid = batch // 4 if batch >= 4 else 1   # >= 4 grid steps when possible
    cap = max(1, min(int(cap_vmem), cap_grid, batch))
    for bb in range(cap, 0, -1):
        if batch % bb == 0:
            return bb
    return 1


def attention_forward(gru_output, hidden_state, params, *,
                      batch_block=None, mxu_dtype=None):
    """gru_output: (B, T, D); hidden_state: (B, H).
    Returns (context (B, D), attn_weights (B, 1, T)), both float32."""
    B, T, D = gru_output.shape
    H = hidden_state.shape[-1]
    wa_w, wa_b, ua_w, ua_b, va_w, va_b = params

    if mxu_dtype is not None:
        # Optional (v6e/v7x): bf16 MXU operands halve the dominant HBM traffic on
        # x and double the MXU rate; tanh/softmax/context math stays float32.
        gru_output = gru_output.astype(mxu_dtype)
        hidden_state = hidden_state.astype(mxu_dtype)
        wa_w = wa_w.astype(mxu_dtype)
        ua_w = ua_w.astype(mxu_dtype)

    if batch_block is None:
        BB = _pick_batch_block(B, T, D, H)
    else:
        BB = max(1, min(int(batch_block), B))
        while B % BB:           # keep BB a divisor of B (no padding needed)
            BB -= 1
    n_blocks = B // BB

    # (B, 1, .) layouts keep BB on a leading, untiled dim of every BlockSpec.
    hidden3 = hidden_state.reshape(B, 1, H)

    const = lambda shape: pl.BlockSpec(shape, lambda b: (0,) * len(shape))

    ctx, attn = pl.pallas_call(
        _attention_kernel,
        out_shape=(
            jax.ShapeDtypeStruct((B, 1, D), jnp.float32),
            jax.ShapeDtypeStruct((B, 1, T), jnp.float32),
        ),
        grid=(n_blocks,),
        in_specs=[
            pl.BlockSpec((BB, T, D), lambda b: (b, 0, 0)),   # gru_output block
            pl.BlockSpec((BB, 1, H), lambda b: (b, 0, 0)),   # hidden_state block
            const((D, H)),   # Wa weight
            const((1, H)),   # Wa bias
            const((H, H)),   # Ua weight
            const((1, H)),   # Ua bias
            const((1, H)),   # Va weight (stored as (1, H) for the lane reduce)
            const((1, 1)),   # Va bias
        ],
        out_specs=(
            pl.BlockSpec((BB, 1, D), lambda b: (b, 0, 0)),   # context
            pl.BlockSpec((BB, 1, T), lambda b: (b, 0, 0)),   # attention weights
        ),
        compiler_params=pltpu.CompilerParams(
            dimension_semantics=("parallel",)),
    )(gru_output, hidden3, wa_w, wa_b, ua_w, ua_b, va_w, va_b)

    return ctx.reshape(B, D), attn


def init_params(key, gru_output_dim, gru_hidden_dim):
    """Parameters stored as (in_features, out_features); Va's weight is kept as
    (1, H) so the in-kernel lane reduce needs no transpose."""
    k = jax.random.split(key, 6)
    D, H = gru_output_dim, gru_hidden_dim
    wa_w = jax.random.normal(k[0], (D, H), jnp.float32) * 0.1
    wa_b = jax.random.normal(k[1], (1, H), jnp.float32) * 0.1
    ua_w = jax.random.normal(k[2], (H, H), jnp.float32) * 0.1
    ua_b = jax.random.normal(k[3], (1, H), jnp.float32) * 0.1
    va_w = jax.random.normal(k[4], (1, H), jnp.float32) * 0.1
    va_b = jax.random.normal(k[5], (1, 1), jnp.float32) * 0.1
    return (wa_w, wa_b, ua_w, ua_b, va_w, va_b)


def _reference(gru_output, hidden_state, params):
    """Pure-JAX reference (HIGHEST matmul precision so it is true f32)."""
    wa_w, wa_b, ua_w, ua_b, va_w, va_b = params
    hi = jax.lax.Precision.HIGHEST
    wa = jnp.einsum("btd,dh->bth", gru_output, wa_w, precision=hi) + wa_b[0]
    ua = jnp.einsum("bh,hk->bk", hidden_state, ua_w, precision=hi) + ua_b[0]
    energy = jnp.tanh(wa + ua[:, None, :])                        # (B,T,H)
    scores = jnp.einsum("bth,h->bt", energy, va_w[0], precision=hi) + va_b[0, 0]
    attn = jax.nn.softmax(scores, axis=1)[:, None, :]             # (B,1,T)
    ctx = jnp.einsum("bqt,btd->bqd", attn, gru_output, precision=hi)[:, 0]
    return ctx, attn


if __name__ == "__main__":
    B, T = 2, 8
    gru_output_dim, gru_hidden_dim = 32, 16

    key = jax.random.PRNGKey(0)
    k_x, k_h, k_p = jax.random.split(key, 3)
    gru_output = jax.random.normal(k_x, (B, T, gru_output_dim), jnp.float32)
    hidden_state = jax.random.normal(k_h, (B, gru_hidden_dim), jnp.float32)
    params = init_params(k_p, gru_output_dim, gru_hidden_dim)

    ctx, attn = attention_forward(gru_output, hidden_state, params)
    jax.block_until_ready((ctx, attn))

    ctx_ref, attn_ref = _reference(gru_output, hidden_state, params)
    assert ctx.shape == (B, gru_output_dim)
    assert attn.shape == (B, 1, T)
    # f32 math on both sides typically agrees to ~1e-5; the slightly loose bound
    # only hedges MXU f32-pass precision differences across TPU generations.
    assert jnp.allclose(ctx, ctx_ref, atol=5e-3, rtol=5e-3)
    assert jnp.allclose(attn, attn_ref, atol=5e-3, rtol=5e-3)

    print("KERNEL_OK")
</pallas_src>

<mosaic_0001>
module attributes {stable_mosaic.version = 11 : i64} {
  func.func @_attention_kernel(%arg0: i32, %arg1: memref<1x8x32xf32, #tpu.memory_space<vmem>>, %arg2: memref<1x1x16xf32, #tpu.memory_space<vmem>>, %arg3: memref<32x16xf32, #tpu.memory_space<vmem>>, %arg4: memref<1x16xf32, #tpu.memory_space<vmem>>, %arg5: memref<16x16xf32, #tpu.memory_space<vmem>>, %arg6: memref<1x16xf32, #tpu.memory_space<vmem>>, %arg7: memref<1x16xf32, #tpu.memory_space<vmem>>, %arg8: memref<1x1xf32, #tpu.memory_space<vmem>>, %arg9: memref<1x1x32xf32, #tpu.memory_space<vmem>>, %arg10: memref<1x1x8xf32, #tpu.memory_space<vmem>>) attributes {dimension_semantics = [#tpu.dimension_semantics<parallel>], iteration_bounds = array<i64: 2>, scalar_prefetch = 0 : i64, scratch_operands = 0 : i64, tpu.core_type = #tpu.core_type<tc>, window_params = [{transform_indices = @transform_0, window_bounds = array<i64: 1, 8, 32>}, {transform_indices = @transform_1, window_bounds = array<i64: 1, 1, 16>}, {pipeline_mode = #tpu.pipeline_mode<synchronous>, transform_indices = @transform_2, window_bounds = array<i64: 32, 16>}, {pipeline_mode = #tpu.pipeline_mode<synchronous>, transform_indices = @transform_3, window_bounds = array<i64: 1, 16>}, {pipeline_mode = #tpu.pipeline_mode<synchronous>, transform_indices = @transform_4, window_bounds = array<i64: 16, 16>}, {pipeline_mode = #tpu.pipeline_mode<synchronous>, transform_indices = @transform_5, window_bounds = array<i64: 1, 16>}, {pipeline_mode = #tpu.pipeline_mode<synchronous>, transform_indices = @transform_6, window_bounds = array<i64: 1, 16>}, {pipeline_mode = #tpu.pipeline_mode<synchronous>, transform_indices = @transform_7, window_bounds = array<i64: 1, 1>}, {transform_indices = @transform_8, window_bounds = array<i64: 1, 1, 32>}, {transform_indices = @transform_9, window_bounds = array<i64: 1, 1, 8>}]} {
    %c0 = arith.constant 0 : index
    %c0_0 = arith.constant 0 : index
    %0 = vector.load %arg3[%c0, %c0_0] : memref<32x16xf32, #tpu.memory_space<vmem>>, vector<32x16xf32>
    %c0_1 = arith.constant 0 : index
    %c0_2 = arith.constant 0 : index
    %1 = vector.load %arg5[%c0_1, %c0_2] : memref<16x16xf32, #tpu.memory_space<vmem>>, vector<16x16xf32>
    %c0_3 = arith.constant 0 : index
    %c0_4 = arith.constant 0 : index
    %2 = vector.load %arg7[%c0_3, %c0_4] : memref<1x16xf32, #tpu.memory_space<vmem>>, vector<1x16xf32>
    %c0_5 = arith.constant 0 : index
    %c0_6 = arith.constant 0 : index
    %3 = vector.load %arg4[%c0_5, %c0_6] : memref<1x16xf32, #tpu.memory_space<vmem>>, vector<1x16xf32>
    %c0_7 = arith.constant 0 : index
    %c0_8 = arith.constant 0 : index
    %4 = vector.load %arg6[%c0_7, %c0_8] : memref<1x16xf32, #tpu.memory_space<vmem>>, vector<1x16xf32>
    %5 = arith.addf %3, %4 : vector<1x16xf32>
    %c0_9 = arith.constant 0 : index
    %c0_10 = arith.constant 0 : index
    %6 = vector.load %arg8[%c0_9, %c0_10] : memref<1x1xf32, #tpu.memory_space<vmem>>, vector<1x1xf32>
    %c0_i32 = arith.constant 0 : i32
    %7 = arith.index_cast %c0_i32 : i32 to index
    %c0_11 = arith.constant 0 : index
    %c0_12 = arith.constant 0 : index
    %8 = vector.load %arg1[%7, %c0_11, %c0_12] : memref<1x8x32xf32, #tpu.memory_space<vmem>>, vector<1x8x32xf32>
    %9 = vector.shape_cast %8 : vector<1x8x32xf32> to vector<8x32xf32>
    %10 = arith.index_cast %c0_i32 : i32 to index
    %c0_13 = arith.constant 0 : index
    %c0_14 = arith.constant 0 : index
    %11 = vector.load %arg2[%10, %c0_13, %c0_14] : memref<1x1x16xf32, #tpu.memory_space<vmem>>, vector<1x1x16xf32>
    %12 = vector.shape_cast %11 : vector<1x1x16xf32> to vector<1x16xf32>
    %cst = arith.constant dense<0.000000e+00> : vector<8x16xf32>
    %13 = tpu.matmul %9, %0, %cst {dimension_numbers = #tpu.dot_dimension_numbers<[1], [0], [0], [1], [0, 0, 1, 1], [], []>} : vector<8x32xf32>, vector<32x16xf32>, vector<8x16xf32> -> vector<8x16xf32>
    %cst_15 = arith.constant dense<0.000000e+00> : vector<1x16xf32>
    %14 = tpu.matmul %12, %1, %cst_15 {dimension_numbers = #tpu.dot_dimension_numbers<[1], [0], [0], [1], [0, 0, 1, 1], [], []>} : vector<1x16xf32>, vector<16x16xf32>, vector<1x16xf32> -> vector<1x16xf32>
    %15 = vector.broadcast %14 : vector<1x16xf32> to vector<8x16xf32>
    %16 = arith.addf %13, %15 : vector<8x16xf32>
    %17 = vector.broadcast %5 : vector<1x16xf32> to vector<8x16xf32>
    %18 = arith.addf %16, %17 : vector<8x16xf32>
    %19 = math.tanh %18 : vector<8x16xf32>
    %20 = vector.broadcast %2 : vector<1x16xf32> to vector<8x16xf32>
    %21 = arith.mulf %19, %20 : vector<8x16xf32>
    %cst_16 = arith.constant dense<0.000000e+00> : vector<8xf32>
    %22 = vector.multi_reduction <add>, %21, %cst_16 [1] : vector<8x16xf32> to vector<8xf32>
    %23 = vector.shape_cast %22 : vector<8xf32> to vector<8x1xf32>
    %24 = vector.broadcast %6 : vector<1x1xf32> to vector<8x1xf32>
    %25 = arith.addf %23, %24 : vector<8x1xf32>
    %cst_17 = arith.constant dense<0xFF800000> : vector<1xf32>
    %26 = vector.multi_reduction <maximumf>, %25, %cst_17 [0] : vector<8x1xf32> to vector<1xf32>
    %27 = vector.shape_cast %26 : vector<1xf32> to vector<1x1xf32>
    %28 = vector.broadcast %27 : vector<1x1xf32> to vector<8x1xf32>
    %29 = arith.subf %25, %28 : vector<8x1xf32>
    %30 = math.exp %29 : vector<8x1xf32>
    %cst_18 = arith.constant dense<0.000000e+00> : vector<1xf32>
    %31 = vector.multi_reduction <add>, %30, %cst_18 [0] : vector<8x1xf32> to vector<1xf32>
    %32 = vector.shape_cast %31 : vector<1xf32> to vector<1x1xf32>
    %33 = vector.broadcast %32 : vector<1x1xf32> to vector<8x1xf32>
    %34 = arith.divf %30, %33 : vector<8x1xf32>
    %35 = vector.broadcast %34 : vector<8x1xf32> to vector<8x32xf32>
    %36 = arith.mulf %35, %9 : vector<8x32xf32>
    %cst_19 = arith.constant dense<0.000000e+00> : vector<32xf32>
    %37 = vector.multi_reduction <add>, %36, %cst_19 [0] : vector<8x32xf32> to vector<32xf32>
    %38 = vector.shape_cast %37 : vector<32xf32> to vector<1x32xf32>
    %39 = arith.index_cast %c0_i32 : i32 to index
    %c0_20 = arith.constant 0 : index
    %c0_21 = arith.constant 0 : index
    %40 = vector.load %arg9[%39, %c0_20, %c0_21] : memref<1x1x32xf32, #tpu.memory_space<vmem>>, vector<1x1x32xf32>
    %41 = vector.shape_cast %40 : vector<1x1x32xf32> to vector<1x32xf32>
    %42 = vector.shape_cast %38 : vector<1x32xf32> to vector<1x1x32xf32>
    tpu.vector_store %arg9[%39, %c0_20, %c0_21], %42 {strides = array<i32>} : memref<1x1x32xf32, #tpu.memory_space<vmem>>, vector<1x1x32xf32>,
    %43 = tpu.transpose %34, [1, 0] : vector<8x1xf32> -> vector<1x8xf32>
    %44 = arith.index_cast %c0_i32 : i32 to index
    %c0_22 = arith.constant 0 : index
    %c0_23 = arith.constant 0 : index
    %45 = vector.load %arg10[%44, %c0_22, %c0_23] : memref<1x1x8xf32, #tpu.memory_space<vmem>>, vector<1x1x8xf32>
    %46 = vector.shape_cast %45 : vector<1x1x8xf32> to vector<1x8xf32>
    %47 = vector.shape_cast %43 : vector<1x8xf32> to vector<1x1x8xf32>
    tpu.vector_store %arg10[%44, %c0_22, %c0_23], %47 {strides = array<i32>} : memref<1x1x8xf32, #tpu.memory_space<vmem>>, vector<1x1x8xf32>,
    %c1_i32 = arith.constant 1 : i32
    return
  }
  func.func @transform_0(%arg0: i32) -> (i32, i32, i32) {
    %c0_i32 = arith.constant 0 : i32
    %c0_i32_0 = arith.constant 0 : i32
    %c0_i32_1 = arith.constant 0 : i32
    return %arg0, %c0_i32, %c0_i32_0 : i32, i32, i32
  }
  func.func @transform_1(%arg0: i32) -> (i32, i32, i32) {
    %c0_i32 = arith.constant 0 : i32
    %c0_i32_0 = arith.constant 0 : i32
    %c0_i32_1 = arith.constant 0 : i32
    return %arg0, %c0_i32, %c0_i32_0 : i32, i32, i32
  }
  func.func @transform_2(%arg0: i32) -> (i32, i32) {
    %c0_i32 = arith.constant 0 : i32
    %c0_i32_0 = arith.constant 0 : i32
    %c0_i32_1 = arith.constant 0 : i32
    return %c0_i32, %c0_i32_0 : i32, i32
  }
  func.func @transform_3(%arg0: i32) -> (i32, i32) {
    %c0_i32 = arith.constant 0 : i32
    %c0_i32_0 = arith.constant 0 : i32
    %c0_i32_1 = arith.constant 0 : i32
    return %c0_i32, %c0_i32_0 : i32, i32
  }
  func.func @transform_4(%arg0: i32) -> (i32, i32) {
    %c0_i32 = arith.constant 0 : i32
    %c0_i32_0 = arith.constant 0 : i32
    %c0_i32_1 = arith.constant 0 : i32
    return %c0_i32, %c0_i32_0 : i32, i32
  }
  func.func @transform_5(%arg0: i32) -> (i32, i32) {
    %c0_i32 = arith.constant 0 : i32
    %c0_i32_0 = arith.constant 0 : i32
    %c0_i32_1 = arith.constant 0 : i32
    return %c0_i32, %c0_i32_0 : i32, i32
  }
  func.func @transform_6(%arg0: i32) -> (i32, i32) {
    %c0_i32 = arith.constant 0 : i32
    %c0_i32_0 = arith.constant 0 : i32
    %c0_i32_1 = arith.constant 0 : i32
    return %c0_i32, %c0_i32_0 : i32, i32
  }
  func.func @transform_7(%arg0: i32) -> (i32, i32) {
    %c0_i32 = arith.constant 0 : i32
    %c0_i32_0 = arith.constant 0 : i32
    %c0_i32_1 = arith.constant 0 : i32
    return %c0_i32, %c0_i32_0 : i32, i32
  }
  func.func @transform_8(%arg0: i32) -> (i32, i32, i32) {
    %c0_i32 = arith.constant 0 : i32
    %c0_i32_0 = arith.constant 0 : i32
    %c0_i32_1 = arith.constant 0 : i32
    return %arg0, %c0_i32, %c0_i32_0 : i32, i32, i32
  }
  func.func @transform_9(%arg0: i32) -> (i32, i32, i32) {
    %c0_i32 = arith.constant 0 : i32
    %c0_i32_0 = arith.constant 0 : i32
    %c0_i32_1 = arith.constant 0 : i32
    return %arg0, %c0_i32, %c0_i32_0 : i32, i32, i32
  }
}

</mosaic_0001>

<bundles_post_ra>
// kernel: tpu_custom_call.1
= control target key start
LH: loop header
LB: loop body
LE: loop exit
PB: predicated region body
PF: predicated region fallthrough
CT: control target
= control target key end

     0   :  { %s990_s0 = inlined_call_operand.vmem [shape: f32[2,8,32], index: 0, kind: input, shape index: {}]   ;;  %s991_s1 = inlined_call_operand.vmem [shape: f32[2,1,16], index: 1, kind: input, shape index: {}]   ;;  %s992_s2 = inlined_call_operand.vmem [shape: f32[32,16], index: 2, kind: input, shape index: {}]   ;;  %s993_s3 = inlined_call_operand.vmem [shape: f32[1,16], index: 3, kind: input, shape index: {}]   ;;  %s994_s4 = inlined_call_operand.vmem [shape: f32[16,16], index: 4, kind: input, shape index: {}]   ;;  %s995_s5 = inlined_call_operand.vmem [shape: f32[1,16], index: 5, kind: input, shape index: {}]   ;;  %s996_s6 = inlined_call_operand.vmem [shape: f32[1,16], index: 6, kind: input, shape index: {}]   ;;  %s997_s7 = inlined_call_operand.<no memory space> [shape: f32[1,1], index: 7, kind: input, shape index: {}]   ;;  %s998_s8 = inlined_call_operand.hbm [shape: f32[2,1,32], index: 8, kind: output, shape index: {0}]   ;;  %s999_s9 = inlined_call_operand.hbm [shape: f32[2,1,8], index: 9, kind: output, shape index: {1}]  }
   0x1   :  { %1000 = sst [smem:[#allocation9_spill]] %s990_s0  ;;  %v15_v0 = vstv %s997_s7 }
   0x2   :  { %1001 = sst [smem:[#allocation10_spill]] %s991_s1  ;;  %16 = vst [vmem:[#allocation2] sm:$0x1] %v15_v0 }
   0x3   :  { %17 = vsyncpa [#allocation4], 0 }
   0x4   :  { %19 = vsyncpa [#allocation4 + $0x1], 0 }
   0x5   :  { %20 = vsyncpa [#allocation6], 0 }
   0x6   :  { %22 = vsyncpa [#allocation6 + $0x1], 0  ;;  %s849_s11 = smov 0   ;;  %s851_s12 = smov 0  }
   0x7   :  { %s853_s13 = smov 0   ;;  %s855_s14 = smov 0  }
   0x8 LB: > { %s870_s7 = sadd.s32 4294967295, %s793_s14   ;;  %s635_s15 = sadd.s32 4294967294, %s793_s14   ;;  %s793_s14 = sphi %s855_s14, %s1009_s14   ;;  %s789_s13 = sphi %s853_s13, %s1008_s13   ;;  %s785_s12 = sphi %s851_s12, %s1007_s12   ;;  %s781_s11 = sphi %s849_s11, %s1006_s11  }
   0x9   : > { %s874_s16 = sadd.s32 1, %s793_s14   ;;  %s213_s17 = sadd.s32 1, %s789_s13 }
   0xa   : > { %s210_s18 = ssub.s32 %s793_s14, %s874_s16  ;;  %p223_p0 = scmp.ne.s32.totalorder %s789_s13, %s785_s12 }
   0xb   : > { %p211_p1 = scmp.eq.s32.totalorder %s210_s18, 0  ;;  %p224_p2 = scmp.eq.s32.totalorder %s870_s7, 1 }
   0xc   : > { %p229_p3 = scmp.ne.s32.totalorder %s785_s12, %s781_s11  ;;  %p230_p4 = scmp.eq.s32.totalorder %s635_s15, 1 }
   0xd   : > { %s885_s19 = scalar_select %p211_p1, %s789_s13, %s213_s17  }
   0xe   : > { %p887_p5 = por %p224_p2, %p223_p0  ;;  %p891_p6 = por %p230_p4, %p229_p3 }
   0xf   : > { %p638_p7 = scmp.ge.s32.totalorder %s793_s14, 1  ;;  %p305_p8 = scmp.lt.s32.totalorder %s793_s14, 3 }
  0x11   : > { %p306_p9 = pnand %p638_p7, %p305_p8 }
  0x12   : > { %p346_p10 = scmp.lt.s32.totalorder (!%p306_p9), %s870_s7, 1  ;;  %s1004_s1 = sld [smem:[#allocation10_spill]] (!%p306_p9) }
  0x13   : > { %309 = sbr.rel (%p306_p9) target bundleno = 514 (0x202), region = 52  ;;  %s1005_s0 = sld [smem:[#allocation9_spill]] (!%p306_p9) }
  0x14   : > { %s719_s18 = scalar_lea.hbm (!%p306_p9), %s998_s8, 2 }
  0x18   : > { %v356_v1 = vld [vmem:[%s992_s2 + $0x18] sm:$0xff]  ;;  %v358_v2 = vld [vmem:[%s994_s4 + $0x8] sm:$0xff]  ;;  %v355_v3 = vld [vmem:[%s992_s2 + $0x10] sm:$0xff]  ;;  %s347_s15 = scalar_select %p346_p10, %s870_s7, 1  ;;  %vm366_vm0 = vcmask 130048   ;;  %vm391_vm1 = vcmask 261120  }
  0x19   : > { %407 = vmatpush.msra.mxu1 %v356_v1  ;;  %384 = vmatpush.msra.mxu0 %v358_v2  ;;  %v357_v4 = vld [vmem:[%s994_s4] sm:$0xff]  ;;  %v354_v5 = vld [vmem:[%s992_s2 + $0x8] sm:$0xff]  ;;  %vm431_vm2 = vcmask 7168   ;;  %v795_v29 = vmov 0   ;;  %vm477_vm7 = vcmask 253952  }
  0x1a   : > { %s352_s22 = scalar_lea.vmem %s1004_s1, %s347_s15  ;;  %v353_v6 = vld [vmem:[%s992_s2] sm:$0xff]  ;;  %s639_s25 = sshll.u32 %s347_s15, 3  ;;  %690 = vset.pattern.permute.xlu0 %v795_v29 }
  0x1b   : > { %408 = vmatpush.msra.mxu1 %v355_v3  ;;  %385 = vmatpush.msra.mxu0 %v357_v4  ;;  %v365_v7 = vld [vmem:[%s352_s22] sm:$0x1]  ;;  %s349_s28 = scalar_lea.vmem %s1005_s0, %s639_s25  ;;  %s939_s22 = sand.u32 1, %s785_s12  }
  0x1c   : > { %640 = vmatmul.msk.f32.vlgmr.msra.gmra.mxu0 %vm366_vm0, %v365_v7  ;;  %v364_v8 = vld [vmem:[%s349_s28] sm:$0xff]  ;;  %s526_s25 = scalar_lea.hbm %s998_s8, %s870_s7  ;;  %s339_s26 = scalar_lea.vmem [#allocation3], %s939_s22 }
  0x1d   : > { %409 = vmatpush.msra.mxu1 %v354_v5  ;;  %v360_v9 = vld [vmem:[%s993_s3] sm:$0x1]  ;;  %s528_s27 = sshll.u32 %s339_s26, 4  ;;  %s530_s28 = sshll.u32 %s526_s25, 4  ;;  %s529_s27 = int_to_ptr.vmem [resolvable:$true] %s528_s27  ;;  %s531_s28 = int_to_ptr.hbm [resolvable:$true] %s530_s28 }
  0x1e   : > { %v361_v10 = vld [vmem:[%s995_s5] sm:$0x1]  ;;  %s514_s29 = scalar_lea.sflag [#allocation4], %s939_s22  ;;  %s713_s30 = sshra.s32 %s531_s28, 4  ;;  %s714_s30 = int_to_ptr.hbm [resolvable:$true] %s713_s30 }
  0x1f   : > { %410 = vmatpush.msra.mxu1 %v353_v6  ;;  %v362_v11 = vadd.f32 %v361_v10, %v360_v9  ;;  %v691_v18 = vld [vmem:[%s996_s6] ss:$0 sm:$0xff]  ;;  %s715_s10 = scalar_lea.hbm %s714_s30, 1  ;;  %p720_p0 = scmp.lt.s32.totalorder %s714_s30, %s998_s8 }
  0x20   : > { %641 = vmatmul.msk.f32.vlgmr.msra.gmra.mxu1 %vm391_vm1, %v364_v8  ;;  %v692_v22 = vld [vmem:[#allocation2] ss:$0 sm:$0xff]  ;;  %p716_p11 = scmp.ne.s32.totalorder %s714_s30, %s715_s10  ;;  %p721_p1 = scmp.lt.s32.totalorder %s719_s18, %s715_s10 }
  0x21   : > { %v416_v14 = vperm.slane %v362_v11, 0 }
  0x22   : > { %p717_p12 = pnand %p716_p11, %p887_p5  ;;  %p722_p2 = por %p721_p1, %p720_p0 }
  0x24   : > { %p718_p13 = pneg %p717_p12 }
  0x26   : > { %p723_p3 = pnand %p722_p2, %p718_p13 }
  0x99   : > { %v387_v12 = vpop.f32.mrf.mxu0 }
  0x9a   : > { %v390_v13 = vperm.slane %v387_v12, 0 }
  0x9d   : > { %v412_v15 = vpop.f32.mrf.mxu1 }
  0x9e   : > { %v413_v16 = vadd.f32 %v412_v15, %v390_v13 }
  0xa0   : > { %v418_v17 = vadd.f32 %v416_v14, %v413_v16 }
  0xa2   : > { %693 = vtanh.f32 %v418_v17 }
  0xa8   : > { %v694_v19 = vpop.eup %693 }
  0xa9   : > { %v423_v20 = vmul.f32 %v694_v19, %v691_v18 }
  0xab   : > { %v424_v21 = vsel %vm366_vm0, %v423_v20, 0.0 }
  0xac   : > { %425 = vadd.xlane.f32.xlu0 %v424_v21 }
 0x11f   : > { %v426_v23 = vpop.xlane.xlu0 %425 }
 0x120   : > { %v430_v24 = vadd.f32 %v692_v22, %v426_v23 }
 0x122   : > { %v432_v25 = vsel %vm431_vm2, %v430_v24, -inf }
 0x123   : > { %v433_v26 = vrot.slane %v432_v25, 4 }
 0x125   : > { %v434_v27 = vmax.f32 %v432_v25, %v433_v26 }
 0x127   : > { %v435_v28 = vrot.slane %v434_v27, 2 }
 0x129   : > { %v436_v30 = vmax.f32 %v434_v27, %v435_v28 }
 0x12b   : > { %v437_v31 = vrot.slane %v436_v30, 1 }
 0x12d   : > { %v438_v32 = vmax.f32 %v436_v30, %v437_v31 }
 0x12f   : > { %v439_v33 = vsub.f32 %v430_v24, %v438_v32 }
 0x131   : > { %v440_v34 = vmul.f32 1.442695, %v439_v33 }
 0x133   : > { %695 = vpow2.f32 %v440_v34 }
 0x139   : > { %v696_v35 = vpop.eup %695 }
 0x13a   : > { %v442_v36 = vsel %vm431_vm2, %v696_v35, 0.0 }
 0x13b   : > { %v443_v37 = vrot.slane %v442_v36, 4 }
 0x13d   : > { %v444_v38 = vadd.f32 %v443_v37, %v442_v36 }
 0x13f   : > { %v445_v39 = vrot.slane %v444_v38, 2 }
 0x141   : > { %v446_v40 = vadd.f32 %v445_v39, %v444_v38 }
 0x143   : > { %v447_v41 = vrot.slane %v446_v40, 1 }
 0x145   : > { %v448_v42 = vadd.f32 %v447_v41, %v446_v40 }
 0x147   : > { %697 = vrcp.f32 %v448_v42  ;;  %v460_v46 = vand.u32 2147483648, %v448_v42  ;;  %v458_v48 = vand.u32 2147483647, %v448_v42  ;;  %vm454_vm4 = vweird.f32 %v448_v42 }
 0x149   : > { %v461_v50 = vor.u32 1.1754944e-38, %v460_v46  ;;  %vm459_vm6 = vcmp.eq.f32.partialorder %v458_v48, 8.507059e+37 }
 0x14d   : > { %v698_v43 = vpop.eup %697 }
 0x14e   : > { %v450_v44 = vmul.f32 %v698_v43, %v448_v42  ;;  %vm455_vm3 = vweird.f32 %v698_v43 }
 0x14f   : > { %vm456_vm5 = vmor %vm454_vm4, %vm455_vm3 }
 0x150   : > { %v451_v45 = vsub.f32 1.0, %v450_v44 }
 0x152   : > { %v452_v47 = vmul.f32 %v698_v43, %v451_v45 }
 0x154   : > { %v453_v49 = vadd.f32 %v698_v43, %v452_v47 }
 0x156   : > { %v457_v51 = vsel %vm456_vm5, %v698_v43, %v453_v49 }
 0x157   : > { %v462_v52 = vsel %vm459_vm6, %v461_v50, %v457_v51 }
 0x158   : > { %v463_v53 = vmul.f32 %v696_v35, %v462_v52 }
 0x15a   : > { %479 = vxpose.xlu1.b32.start.end [1/1] (short) (narrow) %v463_v53, 8  ;;  %466 = vperm.xlu0 %690, %v463_v53  }
 0x1cc   : > { %v467_v54 = vpop.permute.xlu0 %466 }
 0x1cd   : > { %v469_v55 = vmul.f32 %v467_v54, %v364_v8 }
 0x1cf   : > { %v470_v56 = vsel %vm391_vm1, %v469_v55, 0.0 }
 0x1d0   : > { %v471_v57 = vrot.slane %v470_v56, 4 }
 0x1d2   : > { %v472_v58 = vadd.f32 %v471_v57, %v470_v56 }
 0x1d4   : > { %v473_v59 = vrot.slane %v472_v58, 2 }
 0x1d6   : > { %v474_v60 = vadd.f32 %v473_v59, %v472_v58 }
 0x1d8   : > { %v475_v61 = vrot.slane %v474_v60, 1 }
 0x1da   : > { %v476_v62 = vadd.f32 %v475_v61, %v474_v60 }
 0x1dc   : > { %478 = vst.msk [vmem:[%s339_s26] sm:$0x1] %vm477_vm7, %v476_v62 }
 0x1dd   : > { %726 = shalt.err (!%p723_p3)
}
 0x1de   : > { %644 = dma.vmem_to_hbm [thread:$0]  (%p887_p5), %s529_s27, 16, %s531_s28, %s514_s29   ;;  %vm511_vm8 = vcmask 57344  }
 0x1df   : > { %s539_s17 = scalar_lea.hbm %s999_s9, %s870_s7  ;;  %s345_s15 = scalar_lea.vmem [#allocation5], %s939_s22 }
 0x1e0   : > { %s541_s0 = sshll.u32 %s345_s15, 4  ;;  %s543_s1 = sshll.u32 %s539_s17, 4  ;;  %s542_s0 = int_to_ptr.vmem [resolvable:$true] %s541_s0  ;;  %s544_s1 = int_to_ptr.hbm [resolvable:$true] %s543_s1 }
 0x1e1   : > { %s518_s30 = scalar_lea.sflag [#allocation6], %s939_s22  ;;  %s741_s10 = sshra.s32 %s544_s1, 4  ;;  %s742_s10 = int_to_ptr.hbm [resolvable:$true] %s741_s10 }
 0x1e2   : > { %s743_s18 = scalar_lea.hbm %s742_s10, 1  ;;  %s747_s7 = scalar_lea.hbm %s999_s9, 2 }
 0x1e3   : > { %p744_p4 = scmp.ne.s32.totalorder %s742_s10, %s743_s18  ;;  %p748_p9 = scmp.lt.s32.totalorder %s742_s10, %s999_s9 }
 0x1e4   : > { %p749_p10 = scmp.lt.s32.totalorder %s747_s7, %s743_s18 }
 0x1e5   : > { %p745_p7 = pnand %p744_p4, %p887_p5 }
 0x1e6   : > { %p750_p11 = por %p749_p10, %p748_p9 }
 0x1e7   : > { %p746_p8 = pneg %p745_p7 }
 0x1e9   : > { %p751_p12 = pnand %p750_p11, %p746_p8 }
 0x1fe   : > { %v495_v63 = vpop.trf.xlu1 }
 0x1ff   : > { %512 = vst.msk [vmem:[%s345_s15] sm:$0x1] %vm511_vm8, %v495_v63 }
 0x200   : > { %754 = shalt.err (!%p751_p12)
}
 0x201   : > { %645 = dma.vmem_to_hbm [thread:$0]  (%p887_p5), %s542_s0, 16, %s544_s1, %s518_s30  }
 0x202 PF: > { %p655_p13 = scmp.ge.s32.totalorder %s793_s14, 2  ;;  %s555_s22 = sand.u32 1, %s781_s11  }
 0x203   : > { %s556_s24 = scalar_lea.sflag [#allocation4], %s555_s22 }
 0x204   : > { %p649_p0 = pnand %p655_p13, %p891_p6 }
 0x206   : > { %p650_p1 = pneg %p649_p0 }
 0x208   : > { %772 = dma.done.wait (%p650_p1), %s556_s24, 16  }
 0x209   : > { %774 = vsyncadd (%p650_p1), %s556_s24, 4294967280  ;;  %s565_s25 = scalar_lea.sflag [#allocation6], %s555_s22 }
 0x20a   : > { %776 = dma.done.wait (%p650_p1), %s565_s25, 16  }
 0x20b   : > { %778 = vsyncadd (%p650_p1), %s565_s25, 4294967280  ;;  %p25_p5 = scmp.ge.s32.totalorder %s874_s16, 4   ;;  %s1006_s11 = smov %s785_s12 }
 0x20c   : > { %s1007_s12 = smov %s789_s13  ;;  %s1008_s13 = smov %s885_s19 }
 0x20d   : > { %s1009_s14 = smov %s874_s16  ;;  %27 = sbr.rel (!%p25_p5) target bundleno = 8 (0x8), region = 107 }
 0x212   :  { %570 = vsyncpa [#allocation4], 1 }
 0x213   :  { %572 = vsyncpa [#allocation4 + $0x1], 1 }
 0x214   :  { %573 = vsyncpa [#allocation6], 1 }
 0x215   :  { %575 = vsyncpa [#allocation6 + $0x1], 1 }

</bundles_post_ra>
